<compile_context>
chip_gen: v5e
topology: v5e:2x2
jax: 0.10.0
libtpu: 0.0.40
codegen_flags: <defaults>
</compile_context>

<pallas_src>
import math
import numpy as np
import jax
import jax.numpy as jnp
from jax.experimental import pallas as pl
from jax.experimental.pallas import tpu as pltpu


_DEFAULT_BATCH_TILE = 256  # >= 256 and a multiple of 8, per review (F=512, O=256)


# ----------------------------------------------------------------------------
# Pallas kernel: fused (already-flat) x @ W^T + b, then ReLU  (visual_fc)
# bf16 cast fused in-kernel, f32 MXU accumulation, f32 bias-add + ReLU.
# ----------------------------------------------------------------------------
def _fc_relu_kernel(x_ref, w_ref, b_ref, o_ref):
    # x_ref: [TB, F] (f32)   w_ref: [F, O] (bf16, resident)   b_ref: [1, O] (f32)
    # o_ref: [TB, O] (f32)
    x_bf = x_ref[...].astype(jnp.bfloat16)  # VPU cast, hides under the MXU
    acc = jnp.dot(x_bf, w_ref[...], preferred_element_type=jnp.float32)
    acc = acc + b_ref[...]
    o_ref[...] = jnp.maximum(acc, 0.0).astype(o_ref.dtype)


def fused_linear_relu(x_flat, w_t, b_row, *, batch_tile=_DEFAULT_BATCH_TILE):
    """y = relu(x_flat @ w_t + b_row), batch-tiled with a weight-resident BlockSpec."""
    B, F = x_flat.shape
    O = w_t.shape[1]

    if B <= batch_tile:
        # Single tile spanning the whole batch (block == full array dim is valid).
        TB, Bp = B, B
    else:
        TB = batch_tile
        Bp = pl.cdiv(B, TB) * TB
        if Bp != B:
            x_flat = jnp.pad(x_flat, ((0, Bp - B), (0, 0)))

    grid = (Bp // TB,)
    cost = pl.CostEstimate(
        flops=2 * Bp * F * O,
        transcendentals=0,
        bytes_accessed=Bp * F * 4 + F * O * 2 + O * 4 + Bp * O * 4,
    )

    out = pl.pallas_call(
        _fc_relu_kernel,
        out_shape=jax.ShapeDtypeStruct((Bp, O), jnp.float32),
        grid=grid,
        in_specs=[
            pl.BlockSpec((TB, F), lambda i: (i, 0)),   # x tiles stream over the grid
            pl.BlockSpec((F, O), lambda i: (0, 0)),    # weight: DMA'd once, VMEM-resident
            pl.BlockSpec((1, O), lambda i: (0, 0)),    # bias: resident
        ],
        out_specs=pl.BlockSpec((TB, O), lambda i: (i, 0)),
        compiler_params=pltpu.CompilerParams(
            dimension_semantics=("parallel",),          # megacore sharding on v7x
            vmem_limit_bytes=32 * 1024 * 1024,          # explicit (v5e default is 16 MiB)
        ),
        cost_estimate=cost,
    )(x_flat, w_t, b_row)

    return out[:B] if Bp != B else out


# Jitted fast path: flatten NCHW features (metadata-only reshape) and run the kernel.
@jax.jit
def _resnet_fc_forward(rgb_features, w_t, b_row):
    b = rgb_features.shape[0]
    x_flat = rgb_features.reshape(b, -1)  # glue: Flatten()
    return fused_linear_relu(x_flat, w_t, b_row)


# ----------------------------------------------------------------------------
# ResnetEncoder wrapper (non-spatial output, default config)
# ----------------------------------------------------------------------------
class ResnetEncoderPallas:
    def __init__(self, visual_output_shape=(32, 4, 4), output_size=256,
                 key=jax.random.PRNGKey(0)):
        # visual_encoder.output_shape analogue (C, H, W) of the backbone feature map.
        self.visual_output_shape = visual_output_shape
        self.output_shape = (output_size,)
        in_features = int(np.prod(visual_output_shape))
        # Deterministic init mimicking torch.nn.Linear default (U[-1/sqrt(in), 1/sqrt(in)]).
        k_w, k_b = jax.random.split(key)
        bound = 1.0 / math.sqrt(in_features)
        self.weight = jax.random.uniform(
            k_w, (output_size, in_features), minval=-bound, maxval=bound,
            dtype=jnp.float32)  # PyTorch layout [out, in], kept for reference checks
        self.bias = jax.random.uniform(
            k_b, (output_size,), minval=-bound, maxval=bound, dtype=jnp.float32)
        # Pre-transposed bf16 weight [in, out] and row bias [1, out]: done ONCE here.
        self.w_t = jnp.transpose(self.weight).astype(jnp.bfloat16)
        self.b_row = self.bias[None, :]

    def __call__(self, observations):
        # Do not mutate the caller's dict; operate on a shallow copy.
        obs = dict(observations)
        obs_rgb = obs["rgb"]
        if obs_rgb.ndim == 5:  # [T, N, H, W, C] -> [T*N, H, W, C]
            obs["rgb"] = obs_rgb.reshape((-1,) + obs_rgb.shape[2:])
            for k in ("depth", "semantic"):
                if k in obs:
                    v = obs[k]
                    obs[k] = v.reshape((-1,) + v.shape[2:])

        if "rgb_features" in obs:
            x = obs["rgb_features"]  # [B, C, H, W] or [T, N, C, H, W]
            if x.ndim == 5:          # collapse time/env dims like the other sensors
                x = x.reshape((-1,) + x.shape[2:])
        else:
            # TODO(synk): the inner habitat ResNetEncoder backbone (conv stem + GroupNorm
            # + resnet50 blocks) lives in an external module not included here; supply
            # precomputed 'rgb_features' as the forward explicitly supports.
            raise NotImplementedError(
                "visual_encoder backbone not ported; pass 'rgb_features'.")

        # spatial_output=False path: Flatten -> Linear -> ReLU (jitted fused kernel).
        # TODO(synk): spatial_output=True path (nn.Embedding concat) not implemented.
        return _resnet_fc_forward(x, self.w_t, self.b_row)


if __name__ == "__main__":
    key = jax.random.PRNGKey(0)
    k_rgb, k_depth, k_sem, k_feat, k_feat_big, k_params = jax.random.split(key, 6)

    B, H, W = 2, 16, 16
    C_feat, H_feat, W_feat = 32, 4, 4   # backbone output_shape analogue -> F = 512
    output_size = 256

    encoder = ResnetEncoderPallas(
        visual_output_shape=(C_feat, H_feat, W_feat),
        output_size=output_size,
        key=k_params,
    )

    def reference(x_nchw):
        # Emulate the in-kernel bf16 cast with f32 math for a tight comparison.
        xb = x_nchw.shape[0]
        x_flat = x_nchw.reshape(xb, -1)
        x_bf = x_flat.astype(jnp.bfloat16).astype(jnp.float32)
        w_bf = encoder.w_t.astype(jnp.float32)  # [F, O]
        return jnp.maximum(x_bf @ w_bf + encoder.bias, 0.0)

    # --- Case 1: tiny batch (B=2), single-tile grid, full observations dict ---
    observations = {
        "rgb": jax.random.uniform(k_rgb, (B, H, W, 3), dtype=jnp.float32) * 255.0,
        "depth": jax.random.uniform(k_depth, (B, H, W, 1), dtype=jnp.float32),
        "semantic": jax.random.randint(k_sem, (B, H, W, 1), 0, 40).astype(jnp.float32),
        "rgb_features": jax.random.normal(
            k_feat, (B, C_feat, H_feat, W_feat), dtype=jnp.float32),
    }
    out = jax.block_until_ready(encoder(observations))
    ref = reference(observations["rgb_features"])
    assert out.shape == (B, output_size), out.shape
    assert out.dtype == jnp.float32, out.dtype
    assert jnp.allclose(out, ref, atol=1e-2, rtol=1e-2), float(
        jnp.max(jnp.abs(out - ref)))
    # Caller's observations dict must be untouched (no in-place mutation).
    assert observations["rgb"].shape == (B, H, W, 3)

    # --- Case 2: larger batch (B=300 > TB=256), exercises batch grid + padding ---
    B2 = 300
    obs_big = {
        "rgb": jnp.zeros((B2, H, W, 3), dtype=jnp.float32),
        "rgb_features": jax.random.normal(
            k_feat_big, (B2, C_feat, H_feat, W_feat), dtype=jnp.float32),
    }
    out_big = jax.block_until_ready(encoder(obs_big))
    ref_big = reference(obs_big["rgb_features"])
    assert out_big.shape == (B2, output_size), out_big.shape
    assert jnp.allclose(out_big, ref_big, atol=1e-2, rtol=1e-2), float(
        jnp.max(jnp.abs(out_big - ref_big)))

    print("KERNEL_OK")
</pallas_src>

<mosaic_0001>
module attributes {stable_mosaic.version = 11 : i64} {
  func.func @_fc_relu_kernel(%arg0: i32, %arg1: memref<2x512xf32, #tpu.memory_space<vmem>>, %arg2: memref<512x256xbf16, #tpu.memory_space<vmem>>, %arg3: memref<1x256xf32, #tpu.memory_space<vmem>>, %arg4: memref<2x256xf32, #tpu.memory_space<vmem>>) attributes {dimension_semantics = [#tpu.dimension_semantics<parallel>], iteration_bounds = array<i64: 1>, scalar_prefetch = 0 : i64, scratch_operands = 0 : i64, tpu.core_type = #tpu.core_type<tc>, window_params = [{transform_indices = @transform_0, window_bounds = array<i64: 2, 512>}, {pipeline_mode = #tpu.pipeline_mode<synchronous>, transform_indices = @transform_1, window_bounds = array<i64: 512, 256>}, {pipeline_mode = #tpu.pipeline_mode<synchronous>, transform_indices = @transform_2, window_bounds = array<i64: 1, 256>}, {transform_indices = @transform_3, window_bounds = array<i64: 2, 256>}]} {
    %c0 = arith.constant 0 : index
    %c0_0 = arith.constant 0 : index
    %0 = vector.load %arg1[%c0, %c0_0] : memref<2x512xf32, #tpu.memory_space<vmem>>, vector<2x512xf32>
    %1 = arith.truncf %0 : vector<2x512xf32> to vector<2x512xbf16>
    %c0_1 = arith.constant 0 : index
    %c0_2 = arith.constant 0 : index
    %2 = vector.load %arg2[%c0_1, %c0_2] : memref<512x256xbf16, #tpu.memory_space<vmem>>, vector<512x256xbf16>
    %cst = arith.constant dense<0.000000e+00> : vector<2x256xf32>
    %3 = tpu.matmul %1, %2, %cst {dimension_numbers = #tpu.dot_dimension_numbers<[1], [0], [0], [1], [0, 0, 1, 1], [], []>} : vector<2x512xbf16>, vector<512x256xbf16>, vector<2x256xf32> -> vector<2x256xf32>
    %c0_3 = arith.constant 0 : index
    %c0_4 = arith.constant 0 : index
    %4 = vector.load %arg3[%c0_3, %c0_4] : memref<1x256xf32, #tpu.memory_space<vmem>>, vector<1x256xf32>
    %5 = vector.broadcast %4 : vector<1x256xf32> to vector<2x256xf32>
    %6 = arith.addf %3, %5 : vector<2x256xf32>
    %cst_5 = arith.constant 0.000000e+00 : f32
    %7 = vector.broadcast %cst_5 : f32 to vector<2x256xf32>
    %8 = arith.maximumf %6, %7 : vector<2x256xf32>
    %c0_6 = arith.constant 0 : index
    %c0_7 = arith.constant 0 : index
    %9 = vector.load %arg4[%c0_6, %c0_7] : memref<2x256xf32, #tpu.memory_space<vmem>>, vector<2x256xf32>
    tpu.vector_store %arg4[%c0_6, %c0_7], %8 {strides = array<i32>} : memref<2x256xf32, #tpu.memory_space<vmem>>, vector<2x256xf32>,
    return
  }
  func.func @transform_0(%arg0: i32) -> (i32, i32) {
    %c0_i32 = arith.constant 0 : i32
    %c0_i32_0 = arith.constant 0 : i32
    return %arg0, %c0_i32 : i32, i32
  }
  func.func @transform_1(%arg0: i32) -> (i32, i32) {
    %c0_i32 = arith.constant 0 : i32
    %c0_i32_0 = arith.constant 0 : i32
    %c0_i32_1 = arith.constant 0 : i32
    return %c0_i32, %c0_i32_0 : i32, i32
  }
  func.func @transform_2(%arg0: i32) -> (i32, i32) {
    %c0_i32 = arith.constant 0 : i32
    %c0_i32_0 = arith.constant 0 : i32
    %c0_i32_1 = arith.constant 0 : i32
    return %c0_i32, %c0_i32_0 : i32, i32
  }
  func.func @transform_3(%arg0: i32) -> (i32, i32) {
    %c0_i32 = arith.constant 0 : i32
    %c0_i32_0 = arith.constant 0 : i32
    return %arg0, %c0_i32 : i32, i32
  }
}

</mosaic_0001>

<bundles_post_ra>
// kernel: _resnet_fc_forward.1
= control target key start
LH: loop header
LB: loop body
LE: loop exit
PB: predicated region body
PF: predicated region fallthrough
CT: control target
= control target key end

     0   :  { %s1326_s0 = inlined_call_operand.vmem [shape: f32[2,512], index: 0, kind: input, shape index: {}]   ;;  %s1327_s1 = inlined_call_operand.vmem [shape: bf16[512,256], index: 1, kind: input, shape index: {}]   ;;  %s1328_s2 = inlined_call_operand.vmem [shape: f32[1,256], index: 2, kind: input, shape index: {}]   ;;  %s1329_s3 = inlined_call_operand.hbm [shape: f32[2,256], index: 3, kind: output, shape index: {}]  }
   0x1   :  { %v607_v0 = vld [vmem:[%s1327_s1 + $0x70] sm:$0xf]  ;;  %v820_v1 = vld [vmem:[%s1327_s1 + $0x74] sm:$0xf0]  ;;  %v599_v11 = vld [vmem:[%s1327_s1 + $0x60] sm:$0xf] }
   0x2   :  { %v671_v2 = vld [vmem:[%s1327_s1 + $0xf0] sm:$0xf]  ;;  %v608_v3 = vor.u32 %v820_v1, %v607_v0  ;;  %v836_v4 = vld [vmem:[%s1327_s1 + $0xf4] sm:$0xf0]  ;;  %v818_v13 = vld [vmem:[%s1327_s1 + $0x64] sm:$0xf0] }
   0x3   :  { %v735_v5 = vld [vmem:[%s1327_s1 + $0x170] sm:$0xf]  ;;  %v852_v6 = vld [vmem:[%s1327_s1 + $0x174] sm:$0xf0]  ;;  %v672_v7 = vor.u32 %v836_v4, %v671_v2  ;;  %v663_v14 = vld [vmem:[%s1327_s1 + $0xe0] sm:$0xf]  ;;  %v600_v16 = vor.u32 %v818_v13, %v599_v11 }
   0x4   :  { %v736_v8 = vor.u32 %v852_v6, %v735_v5  ;;  %v799_v9 = vld [vmem:[%s1327_s1 + $0x1f0] sm:$0xf]  ;;  %v868_v10 = vld [vmem:[%s1327_s1 + $0x1f4] sm:$0xf0]  ;;  %420 = vmatpush.bf16.msra.mxu0 %v608_v3  ;;  %v834_v15 = vld [vmem:[%s1327_s1 + $0xe4] sm:$0xf0] }
   0x5   :  { %v800_v12 = vor.u32 %v868_v10, %v799_v9  ;;  %433 = vmatpush.bf16.msra.mxu1 %v672_v7  ;;  %v664_v17 = vor.u32 %v834_v15, %v663_v14  ;;  %v727_v18 = vld [vmem:[%s1327_s1 + $0x160] sm:$0xf]  ;;  %v850_v19 = vld [vmem:[%s1327_s1 + $0x164] sm:$0xf0]  ;;  %v591_v23 = vld [vmem:[%s1327_s1 + $0x50] sm:$0xf] }
   0x6   :  { %446 = vmatpush.bf16.msra.mxu2 %v736_v8  ;;  %v791_v20 = vld [vmem:[%s1327_s1 + $0x1e0] sm:$0xf]  ;;  %v728_v21 = vor.u32 %v850_v19, %v727_v18  ;;  %v866_v22 = vld [vmem:[%s1327_s1 + $0x1e4] sm:$0xf0]  ;;  %v816_v24 = vld [vmem:[%s1327_s1 + $0x54] sm:$0xf0] }
   0x7   :  { %459 = vmatpush.bf16.msra.mxu3 %v800_v12  ;;  %v792_v25 = vor.u32 %v866_v22, %v791_v20  ;;  %v655_v26 = vld [vmem:[%s1327_s1 + $0xd0] sm:$0xf]  ;;  %v832_v27 = vld [vmem:[%s1327_s1 + $0xd4] sm:$0xf0]  ;;  %v592_v29 = vor.u32 %v816_v24, %v591_v23  ;;  %v583_v35 = vld [vmem:[%s1327_s1 + $0x40] sm:$0xf] }
   0x8   :  { %v719_v28 = vld [vmem:[%s1327_s1 + $0x150] sm:$0xf]  ;;  %421 = vmatpush.bf16.msra.mxu0 %v600_v16  ;;  %v848_v30 = vld [vmem:[%s1327_s1 + $0x154] sm:$0xf0]  ;;  %v656_v33 = vor.u32 %v832_v27, %v655_v26  ;;  %v814_v36 = vld [vmem:[%s1327_s1 + $0x44] sm:$0xf0] }
   0x9   :  { %v783_v31 = vld [vmem:[%s1327_s1 + $0x1d0] sm:$0xf]  ;;  %v864_v32 = vld [vmem:[%s1327_s1 + $0x1d4] sm:$0xf0]  ;;  %434 = vmatpush.bf16.msra.mxu1 %v664_v17  ;;  %v720_v34 = vor.u32 %v848_v30, %v719_v28  ;;  %v647_v37 = vld [vmem:[%s1327_s1 + $0xc0] sm:$0xf]  ;;  %v584_v44 = vor.u32 %v814_v36, %v583_v35 }
   0xa   :  { %447 = vmatpush.bf16.msra.mxu2 %v728_v21  ;;  %v784_v38 = vor.u32 %v864_v32, %v783_v31  ;;  %v830_v39 = vld [vmem:[%s1327_s1 + $0xc4] sm:$0xf0]  ;;  %v711_v40 = vld [vmem:[%s1327_s1 + $0x140] sm:$0xf]  ;;  %v575_v47 = vld [vmem:[%s1327_s1 + $0x30] sm:$0xf] }
   0xb   :  { %460 = vmatpush.bf16.msra.mxu3 %v792_v25  ;;  %v846_v41 = vld [vmem:[%s1327_s1 + $0x144] sm:$0xf0]  ;;  %v775_v42 = vld [vmem:[%s1327_s1 + $0x1c0] sm:$0xf]  ;;  %v648_v45 = vor.u32 %v830_v39, %v647_v37  ;;  %v812_v48 = vld [vmem:[%s1327_s1 + $0x34] sm:$0xf0] }
   0xc   :  { %v862_v43 = vld [vmem:[%s1327_s1 + $0x1c4] sm:$0xf0]  ;;  %422 = vmatpush.bf16.msra.mxu0 %v592_v29  ;;  %v712_v46 = vor.u32 %v846_v41, %v711_v40  ;;  %v639_v49 = vld [vmem:[%s1327_s1 + $0xb0] sm:$0xf]  ;;  %v828_v51 = vld [vmem:[%s1327_s1 + $0xb4] sm:$0xf0]  ;;  %v576_v56 = vor.u32 %v812_v48, %v575_v47 }
   0xd   :  { %435 = vmatpush.bf16.msra.mxu1 %v656_v33  ;;  %v776_v50 = vor.u32 %v862_v43, %v775_v42  ;;  %v703_v52 = vld [vmem:[%s1327_s1 + $0x130] sm:$0xf]  ;;  %v844_v53 = vld [vmem:[%s1327_s1 + $0x134] sm:$0xf0]  ;;  %v640_v57 = vor.u32 %v828_v51, %v639_v49  ;;  %v567_v59 = vld [vmem:[%s1327_s1 + $0x20] sm:$0xf] }
   0xe   :  { %448 = vmatpush.bf16.msra.mxu2 %v720_v34  ;;  %v767_v54 = vld [vmem:[%s1327_s1 + $0x1b0] sm:$0xf]  ;;  %v860_v55 = vld [vmem:[%s1327_s1 + $0x1b4] sm:$0xf0]  ;;  %v704_v58 = vor.u32 %v844_v53, %v703_v52  ;;  %v810_v60 = vld [vmem:[%s1327_s1 + $0x24] sm:$0xf0] }
   0xf   :  { %461 = vmatpush.bf16.msra.mxu3 %v784_v38  ;;  %v631_v61 = vld [vmem:[%s1327_s1 + $0xa0] sm:$0xf]  ;;  %v768_v62 = vor.u32 %v860_v55, %v767_v54  ;;  %v826_v63 = vld [vmem:[%s1327_s1 + $0xa4] sm:$0xf0]  ;;  %v568_v4 = vor.u32 %v810_v60, %v567_v59  ;;  %v559_v7 = vld [vmem:[%s1327_s1 + $0x10] sm:$0xf] }
  0x10   :  { %423 = vmatpush.bf16.msra.mxu0 %v584_v44  ;;  %v695_v0 = vld [vmem:[%s1327_s1 + $0x120] sm:$0xf]  ;;  %v842_v1 = vld [vmem:[%s1327_s1 + $0x124] sm:$0xf0]  ;;  %v632_v5 = vor.u32 %v826_v63, %v631_v61  ;;  %v808_v8 = vld [vmem:[%s1327_s1 + $0x14] sm:$0xf0] }
  0x11   :  { %436 = vmatpush.bf16.msra.mxu1 %v648_v45  ;;  %v759_v2 = vld [vmem:[%s1327_s1 + $0x1a0] sm:$0xf]  ;;  %v858_v3 = vld [vmem:[%s1327_s1 + $0x1a4] sm:$0xf0]  ;;  %v696_v6 = vor.u32 %v842_v1, %v695_v0  ;;  %v623_v9 = vld [vmem:[%s1327_s1 + $0x90] sm:$0xf]  ;;  %v560_v17 = vor.u32 %v808_v8, %v559_v7 }
  0x12   :  { %449 = vmatpush.bf16.msra.mxu2 %v712_v46  ;;  %v760_v10 = vor.u32 %v858_v3, %v759_v2  ;;  %v824_v11 = vld [vmem:[%s1327_s1 + $0x94] sm:$0xf0]  ;;  %v687_v12 = vld [vmem:[%s1327_s1 + $0x110] sm:$0xf]  ;;  %v551_v16 = vld [vmem:[%s1327_s1] sm:$0xf] }
  0x13   :  { %462 = vmatpush.bf16.msra.mxu3 %v776_v50  ;;  %v840_v13 = vld [vmem:[%s1327_s1 + $0x114] sm:$0xf0]  ;;  %v751_v14 = vld [vmem:[%s1327_s1 + $0x190] sm:$0xf]  ;;  %v806_v18 = vld [vmem:[%s1327_s1 + $0x4] sm:$0xf0]  ;;  %v624_v21 = vor.u32 %v824_v11, %v623_v9 }
  0x14   :  { %424 = vmatpush.bf16.msra.mxu0 %v576_v56  ;;  %v856_v15 = vld [vmem:[%s1327_s1 + $0x194] sm:$0xf0]  ;;  %v615_v19 = vld [vmem:[%s1327_s1 + $0x80] sm:$0xf]  ;;  %v822_v20 = vld [vmem:[%s1327_s1 + $0x84] sm:$0xf0]  ;;  %v688_v22 = vor.u32 %v840_v13, %v687_v12  ;;  %v552_v33 = vor.u32 %v806_v18, %v551_v16 }
  0x15   :  { %437 = vmatpush.bf16.msra.mxu1 %v640_v57  ;;  %v679_v23 = vld [vmem:[%s1327_s1 + $0x100] sm:$0xf]  ;;  %v838_v24 = vld [vmem:[%s1327_s1 + $0x104] sm:$0xf0]  ;;  %v752_v26 = vor.u32 %v856_v15, %v751_v14  ;;  %v819_v28 = vld [vmem:[%s1327_s1 + $0x74] sm:$0xf]  ;;  %v616_v36 = vor.u32 %v822_v20, %v615_v19 }
  0x16   :  { %450 = vmatpush.bf16.msra.mxu2 %v704_v58  ;;  %v743_v25 = vld [vmem:[%s1327_s1 + $0x180] sm:$0xf]  ;;  %v854_v27 = vld [vmem:[%s1327_s1 + $0x184] sm:$0xf0]  ;;  %v609_v29 = vld [vmem:[%s1327_s1 + $0x78] sm:$0xf0]  ;;  %v680_v37 = vor.u32 %v838_v24, %v679_v23 }
  0x17   :  { %463 = vmatpush.bf16.msra.mxu3 %v768_v62  ;;  %v835_v30 = vld [vmem:[%s1327_s1 + $0xf4] sm:$0xf]  ;;  %v673_v31 = vld [vmem:[%s1327_s1 + $0xf8] sm:$0xf0]  ;;  %v15_v32 = vld [vmem:[%s1326_s0] sm:$0xff]  ;;  %v744_v40 = vor.u32 %v854_v27, %v743_v25  ;;  %v612_v41 = vor.u32 %v819_v28, %v609_v29 }
  0x18   :  { %425 = vmatpush.bf16.msra.mxu0 %v568_v4  ;;  %v851_v34 = vld [vmem:[%s1327_s1 + $0x174] sm:$0xf]  ;;  %v737_v35 = vld [vmem:[%s1327_s1 + $0x178] sm:$0xf0]  ;;  %17 = vst [vmem:[#allocation1] ss:$4 sm:$0xff] %v15_v32  ;;  %v676_v43 = vor.u32 %v835_v30, %v673_v31 }
  0x19   :  { %438 = vmatpush.bf16.msra.mxu1 %v632_v5  ;;  %v867_v38 = vld [vmem:[%s1327_s1 + $0x1f4] sm:$0xf]  ;;  %v801_v39 = vld [vmem:[%s1327_s1 + $0x1f8] sm:$0xf0]  ;;  %v817_v42 = vld [vmem:[%s1327_s1 + $0x64] sm:$0xf]  ;;  %v740_v44 = vor.u32 %v851_v34, %v737_v35 }
  0x1a   :  { %451 = vmatpush.bf16.msra.mxu2 %v696_v6  ;;  %v601_v45 = vld [vmem:[%s1327_s1 + $0x68] sm:$0xf0]  ;;  %v833_v46 = vld [vmem:[%s1327_s1 + $0xe4] sm:$0xf]  ;;  %v804_v48 = vor.u32 %v867_v38, %v801_v39  ;;  %v815_v53 = vld [vmem:[%s1327_s1 + $0x54] sm:$0xf] }
  0x1b   :  { %464 = vmatpush.bf16.msra.mxu3 %v760_v10  ;;  %v665_v47 = vld [vmem:[%s1327_s1 + $0xe8] sm:$0xf0]  ;;  %v849_v49 = vld [vmem:[%s1327_s1 + $0x164] sm:$0xf]  ;;  %v593_v54 = vld [vmem:[%s1327_s1 + $0x58] sm:$0xf0]  ;;  %v604_v55 = vor.u32 %v817_v42, %v601_v45 }
  0x1c   :  { %426 = vmatpush.bf16.msra.mxu0 %v560_v17  ;;  %v729_v50 = vld [vmem:[%s1327_s1 + $0x168] sm:$0xf0]  ;;  %v865_v51 = vld [vmem:[%s1327_s1 + $0x1e4] sm:$0xf]  ;;  %v831_v56 = vld [vmem:[%s1327_s1 + $0xd4] sm:$0xf]  ;;  %v668_v60 = vor.u32 %v833_v46, %v665_v47  ;;  %v596_v9 = vor.u32 %v815_v53, %v593_v54 }
  0x1d   :  { %439 = vmatpush.bf16.msra.mxu1 %v624_v21  ;;  %v793_v52 = vld [vmem:[%s1327_s1 + $0x1e8] sm:$0xf0]  ;;  %v657_v57 = vld [vmem:[%s1327_s1 + $0xd8] sm:$0xf0]  ;;  %v847_v58 = vld [vmem:[%s1327_s1 + $0x154] sm:$0xf]  ;;  %v732_v61 = vor.u32 %v849_v49, %v729_v50 }
  0x1e   :  { %452 = vmatpush.bf16.msra.mxu2 %v688_v22  ;;  %v721_v59 = vld [vmem:[%s1327_s1 + $0x158] sm:$0xf0]  ;;  %v796_v0 = vor.u32 %v865_v51, %v793_v52  ;;  %v863_v5 = vld [vmem:[%s1327_s1 + $0x1d4] sm:$0xf]  ;;  %v660_v10 = vor.u32 %v831_v56, %v657_v57  ;;  %v813_v12 = vld [vmem:[%s1327_s1 + $0x44] sm:$0xf] }
  0x1f   :  { %465 = vmatpush.bf16.msra.mxu3 %v752_v26  ;;  %v20_v62 = vld.sshfl [vmem:[#allocation1 + $0x10] sm:$0xff pattern:$0x73625140]  ;;  %v18_v63 = vld.sshfl [vmem:[#allocation1] sm:$0xff pattern:$0x73625140]  ;;  %v724_v11 = vor.u32 %v847_v58, %v721_v59 }
  0x20   :  { %427 = vmatpush.bf16.msra.mxu0 %v552_v33  ;;  %v1178_v1 = vpack.c.bf16 %v20_v62, %v20_v62  ;;  %v1180_v2 = vpack.c.bf16 %v18_v63, %v18_v63  ;;  %v21_v3 = vld.sshfl [vmem:[#allocation1 + $0x18] sm:$0xff pattern:$0x73625140]  ;;  %v19_v4 = vld.sshfl [vmem:[#allocation1 + $0x8] sm:$0xff pattern:$0x73625140] }
  0x21   :  { %440 = vmatpush.bf16.msra.mxu1 %v616_v36  ;;  %v785_v6 = vld [vmem:[%s1327_s1 + $0x1d8] sm:$0xf0]  ;;  %v1188_v7 = vpack.c.bf16 %v21_v3, %v21_v3  ;;  %v1190_v8 = vpack.c.bf16 %v19_v4, %v19_v4  ;;  %v585_v13 = vld [vmem:[%s1327_s1 + $0x48] sm:$0xf0]  ;;  %v829_v14 = vld [vmem:[%s1327_s1 + $0xc4] sm:$0xf] }
  0x22   :  { %453 = vmatpush.bf16.msra.mxu2 %v680_v37  ;;  %v788_v15 = vor.u32 %v863_v5, %v785_v6  ;;  %v649_v16 = vld [vmem:[%s1327_s1 + $0xc8] sm:$0xf0]  ;;  %v845_v17 = vld [vmem:[%s1327_s1 + $0x144] sm:$0xf]  ;;  %v588_v21 = vor.u32 %v813_v12, %v585_v13  ;;  %v811_v24 = vld [vmem:[%s1327_s1 + $0x34] sm:$0xf] }
  0x23   :  { %466 = vmatpush.bf16.msra.mxu3 %v744_v40  ;;  %428 = vmatmul.bf16.vlgmr.msra.gmra.mxu0 %v1180_v2  ;;  %v713_v18 = vld [vmem:[%s1327_s1 + $0x148] sm:$0xf0]  ;;  %v861_v19 = vld [vmem:[%s1327_s1 + $0x1c4] sm:$0xf]  ;;  %v652_v22 = vor.u32 %v829_v14, %v649_v16  ;;  %v577_v25 = vld [vmem:[%s1327_s1 + $0x38] sm:$0xf0] }
  0x24   :  { %472 = vmatpush.bf16.msrb.mxu0 %v612_v41  ;;  %441 = vmatmul.bf16.vlgmr.msra.gmra.mxu1 %v1190_v8  ;;  %v777_v20 = vld [vmem:[%s1327_s1 + $0x1c8] sm:$0xf0]  ;;  %v716_v23 = vor.u32 %v845_v17, %v713_v18  ;;  %v827_v26 = vld [vmem:[%s1327_s1 + $0xb4] sm:$0xf]  ;;  %v641_v28 = vld [vmem:[%s1327_s1 + $0xb8] sm:$0xf0]  ;;  %v580_v33 = vor.u32 %v811_v24, %v577_v25 }
  0x25   :  { %485 = vmatpush.bf16.msrb.mxu1 %v676_v43  ;;  %454 = vmatmul.bf16.vlgmr.msra.gmra.mxu2 %v1178_v1  ;;  %v780_v27 = vor.u32 %v861_v19, %v777_v20  ;;  %v843_v29 = vld [vmem:[%s1327_s1 + $0x134] sm:$0xf]  ;;  %v705_v30 = vld [vmem:[%s1327_s1 + $0x138] sm:$0xf0] }
  0x26   :  { %498 = vmatpush.bf16.msrb.mxu2 %v740_v44  ;;  %467 = vmatmul.bf16.vlgmr.msra.gmra.mxu3 %v1188_v7  ;;  %v859_v31 = vld [vmem:[%s1327_s1 + $0x1b4] sm:$0xf]  ;;  %v769_v32 = vld [vmem:[%s1327_s1 + $0x1b8] sm:$0xf0] }
  0x27   :  { %511 = vmatpush.bf16.msrb.mxu3 %v804_v48 }
  0x28   :  { %473 = vmatpush.bf16.msrb.mxu0 %v604_v55 }
  0x29   :  { %486 = vmatpush.bf16.msrb.mxu1 %v668_v60 }
  0x2a   :  { %499 = vmatpush.bf16.msrb.mxu2 %v732_v61 }
  0x2b   :  { %512 = vmatpush.bf16.msrb.mxu3 %v796_v0 }
  0x2c   :  { %474 = vmatpush.bf16.msrb.mxu0 %v596_v9 }
  0x2d   :  { %487 = vmatpush.bf16.msrb.mxu1 %v660_v10 }
  0x2e   :  { %500 = vmatpush.bf16.msrb.mxu2 %v724_v11 }
  0x2f   :  { %513 = vmatpush.bf16.msrb.mxu3 %v788_v15 }
  0x30   :  { %475 = vmatpush.bf16.msrb.mxu0 %v588_v21 }
  0x31   :  { %8 = vsyncpa [#allocation3], 0  ;;  %488 = vmatpush.bf16.msrb.mxu1 %v652_v22  ;;  %v644_v34 = vor.u32 %v827_v26, %v641_v28  ;;  %v708_v35 = vor.u32 %v843_v29, %v705_v30  ;;  %v809_v36 = vld [vmem:[%s1327_s1 + $0x24] sm:$0xf]  ;;  %v569_v37 = vld [vmem:[%s1327_s1 + $0x28] sm:$0xf0]  ;;  %v772_v39 = vor.u32 %v859_v31, %v769_v32 }
  0x32   :  { %501 = vmatpush.bf16.msrb.mxu2 %v716_v23  ;;  %v825_v38 = vld [vmem:[%s1327_s1 + $0xa4] sm:$0xf]  ;;  %v633_v40 = vld [vmem:[%s1327_s1 + $0xa8] sm:$0xf0]  ;;  %v572_v45 = vor.u32 %v809_v36, %v569_v37  ;;  %v807_v48 = vld [vmem:[%s1327_s1 + $0x14] sm:$0xf] }
  0x33   :  { %514 = vmatpush.bf16.msrb.mxu3 %v780_v27  ;;  %v841_v41 = vld [vmem:[%s1327_s1 + $0x124] sm:$0xf]  ;;  %v697_v42 = vld [vmem:[%s1327_s1 + $0x128] sm:$0xf0]  ;;  %v636_v46 = vor.u32 %v825_v38, %v633_v40  ;;  %v561_v49 = vld [vmem:[%s1327_s1 + $0x18] sm:$0xf0] }
  0x34   :  { %v857_v43 = vld [vmem:[%s1327_s1 + $0x1a4] sm:$0xf]  ;;  %v761_v44 = vld [vmem:[%s1327_s1 + $0x1a8] sm:$0xf0]  ;;  %476 = vmatpush.bf16.msrb.mxu0 %v580_v33  ;;  %v700_v47 = vor.u32 %v841_v41, %v697_v42  ;;  %v823_v50 = vld [vmem:[%s1327_s1 + $0x94] sm:$0xf]  ;;  %v564_v57 = vor.u32 %v807_v48, %v561_v49 }
  0x35   :  { %489 = vmatpush.bf16.msrb.mxu1 %v644_v34  ;;  %v764_v51 = vor.u32 %v857_v43, %v761_v44  ;;  %v625_v52 = vld [vmem:[%s1327_s1 + $0x98] sm:$0xf0]  ;;  %v839_v53 = vld [vmem:[%s1327_s1 + $0x114] sm:$0xf]  ;;  %v805_v60 = vld [vmem:[%s1327_s1 + $0x4] sm:$0xf] }
  0x36   :  { %502 = vmatpush.bf16.msrb.mxu2 %v708_v35  ;;  %v689_v54 = vld [vmem:[%s1327_s1 + $0x118] sm:$0xf0]  ;;  %v855_v55 = vld [vmem:[%s1327_s1 + $0x194] sm:$0xf]  ;;  %v628_v58 = vor.u32 %v823_v50, %v625_v52  ;;  %v553_v61 = vld [vmem:[%s1327_s1 + $0x8] sm:$0xf0] }
  0x37   :  { %515 = vmatpush.bf16.msrb.mxu3 %v772_v39  ;;  %v753_v56 = vld [vmem:[%s1327_s1 + $0x198] sm:$0xf0]  ;;  %v692_v59 = vor.u32 %v839_v53, %v689_v54  ;;  %v821_v62 = vld [vmem:[%s1327_s1 + $0x84] sm:$0xf]  ;;  %v617_v0 = vld [vmem:[%s1327_s1 + $0x88] sm:$0xf0]  ;;  %v556_v9 = vor.u32 %v805_v60, %v553_v61 }
  0x38   :  { %477 = vmatpush.bf16.msrb.mxu0 %v572_v45  ;;  %v756_v63 = vor.u32 %v855_v55, %v753_v56  ;;  %v837_v3 = vld [vmem:[%s1327_s1 + $0x104] sm:$0xf]  ;;  %v681_v4 = vld [vmem:[%s1327_s1 + $0x108] sm:$0xf0]  ;;  %v620_v10 = vor.u32 %v821_v62, %v617_v0  ;;  %v94_v21 = vld [vmem:[%s1328_s2] sm:$0x3] }
  0x39   :  { %490 = vmatpush.bf16.msrb.mxu1 %v636_v46  ;;  %v853_v5 = vld [vmem:[%s1327_s1 + $0x184] sm:$0xf]  ;;  %v745_v6 = vld [vmem:[%s1327_s1 + $0x188] sm:$0xf0]  ;;  %v684_v11 = vor.u32 %v837_v3, %v681_v4  ;;  %v96_v22 = vperm.slane %v94_v21, 0  ;;  %s896_s23 = smov [#allocation2]  }
  0x3a   :  { %503 = vmatpush.bf16.msrb.mxu2 %v700_v47  ;;  %v748_v12 = vor.u32 %v853_v5, %v745_v6  ;;  %s538_s24 = sshll.u32 %s896_s23, 4  ;;  %s540_s26 = sshll.u32 %s1329_s3, 4  ;;  %vm529_vm0 = vcmask 1041408   ;;  %s539_s24 = int_to_ptr.vmem [resolvable:$true] %s538_s24  ;;  %s541_s26 = int_to_ptr.hbm [resolvable:$true] %s540_s26 }
  0x3b   :  { %516 = vmatpush.bf16.msrb.mxu3 %v764_v51 }
  0x3c   :  { %478 = vmatpush.bf16.msrb.mxu0 %v564_v57 }
  0x3d   :  { %491 = vmatpush.bf16.msrb.mxu1 %v628_v58 }
  0x3e   :  { %504 = vmatpush.bf16.msrb.mxu2 %v692_v59 }
  0x3f   :  { %517 = vmatpush.bf16.msrb.mxu3 %v756_v63 }
  0x40   :  { %479 = vmatpush.bf16.msrb.mxu0 %v556_v9 }
  0x41   :  { %492 = vmatpush.bf16.msrb.mxu1 %v620_v10 }
  0x42   :  { %505 = vmatpush.bf16.msrb.mxu2 %v684_v11 }
  0x43   :  { %518 = vmatpush.bf16.msrb.mxu3 %v748_v12  ;;  %480 = vmatmul.bf16.vlgmr.msrb.gmra.mxu0 %v1180_v2  ;;  %v97_v2 = vperm.slane %v94_v21, 1 }
  0x44   :  { %493 = vmatmul.bf16.vlgmr.msrb.gmra.mxu1 %v1190_v8 }
  0x45   :  { %506 = vmatmul.bf16.vlgmr.msrb.gmra.mxu2 %v1178_v1 }
  0x46   :  { %519 = vmatmul.bf16.vlgmr.msrb.gmra.mxu3 %v1188_v7 }
  0xa0   :  { %v429_v13 = vpop.f32.mrf.mxu0 }
  0xa1   :  { %v442_v14 = vpop.f32.mrf.mxu1  ;;  %v430_v23 = vadd.f32 %v429_v13, %v96_v22 }
  0xa3   :  { %v443_v25 = vadd.f32 %v442_v14, %v430_v23 }
  0xa8   :  { %v455_v15 = vpop.f32.mrf.mxu2  ;;  %v431_v17 = vpop.f32.mrf.mxu0 }
  0xa9   :  { %v468_v16 = vpop.f32.mrf.mxu3  ;;  %v444_v18 = vpop.f32.mrf.mxu1  ;;  %v456_v26 = vadd.f32 %v455_v15, %v443_v25 }
  0xab   :  { %v469_v32 = vadd.f32 %v468_v16, %v456_v26 }
  0xad   :  { %v524_v35 = vmax.f32 %v469_v32, 0.0 }
  0xb0   :  { %v457_v19 = vpop.f32.mrf.mxu2 }
  0xb1   :  { %v470_v20 = vpop.f32.mrf.mxu3 }
  0xc0   :  { %v481_v8 = vpop.f32.mrf.mxu0 }
  0xc1   :  { %v482_v24 = vadd.f32 %v481_v8, %v97_v2  ;;  %v494_v1 = vpop.f32.mrf.mxu1 }
  0xc3   :  { %v495_v7 = vadd.f32 %v494_v1, %v482_v24 }
  0xc8   :  { %v507_v27 = vpop.f32.mrf.mxu2  ;;  %v483_v30 = vpop.f32.mrf.mxu0 }
  0xc9   :  { %v508_v28 = vadd.f32 %v507_v27, %v495_v7  ;;  %v520_v29 = vpop.f32.mrf.mxu3  ;;  %v496_v31 = vpop.f32.mrf.mxu1 }
  0xcb   :  { %v521_v33 = vadd.f32 %v520_v29, %v508_v28 }
  0xcd   :  { %v525_v34 = vmax.f32 %v521_v33, 0.0 }
  0xcf   :  { %v528_v36 = vrot.slane %v525_v34, 6 }
  0xd0   :  { %v509_v37 = vpop.f32.mrf.mxu2 }
  0xd1   :  { %v522_v38 = vpop.f32.mrf.mxu3  ;;  %v530_v39 = vsel %vm529_vm0, %v524_v35, %v528_v36 }
  0xd2   :  { %532 = vst [vmem:[#allocation2] sm:$0xf] %v530_v39 }
  0xd3   :  { %543 = dma.vmem_to_hbm [thread:$0]  %s539_s24, 64, %s541_s26, [#allocation3]  }
  0xd4   :  { %894 = dma.done.wait [#allocation3], 64  }
  0xd5   :  { %895 = vsyncadd [#allocation3], 4294967232 }
  0xd6   :  { %548 = vsyncpa [#allocation3], 1 }

</bundles_post_ra>
